<compile_context>
chip_gen: v5e
topology: v5e:2x2
jax: 0.10.0
libtpu: 0.0.40
codegen_flags: <defaults>
</compile_context>

<pallas_src>
import math
import numpy as np
import jax
import jax.numpy as jnp
from jax.experimental import pallas as pl
from jax.experimental.pallas import tpu as pltpu

# ---------------- config (mirrors the relevant Options fields) ----------------
INPUT_SIZE = 32
PATCH_SIZE = 8
GAMBA_DIM = 32          # opt.gamba_dim == decoder transformer_dim for 'none' upsampler
NUM_VIEWS = 2           # opt.num_input_views
PLUCKER_RAY = False     # -> 3 input channels
UPSAMPLER_TYPE = "none" # -> tokens = concat of 4 scan orders, reshape_upsample = identity
INIT_DENSITY = 0.1
POS_BOUND = 0.8
N_COORD_BINS = 21
N_QUAT = 32

HEAD_PAD = 128          # fused head columns: 102 useful, zero-padded to a full lane width
OUT_PAD = 128           # decoder output columns: 14 useful, padded for lane-dense stores
ROW_GRANULE = 16        # bf16-friendly sublane granule for row tiles
MAX_TILE = 512          # rows per grid step (measured sweet spot for mem/overhead-bound)

# fused head column layout inside the single [D, 128] head weight
_XYZ0, _XYZ1 = 0, 3 * N_COORD_BINS            # 0 .. 63
_OP0, _OP1 = _XYZ1, _XYZ1 + 1                 # 63 .. 64
_SC0, _SC1 = _OP1, _OP1 + 3                   # 64 .. 67
_ROT0, _ROT1 = _SC1, _SC1 + N_QUAT            # 67 .. 99
_RGB0, _RGB1 = _ROT1, _ROT1 + 3               # 99 .. 102


def _canonical_quaternions():
    q = [[1, 0, 0, 0], [0, 1, 0, 0], [0, 0, 1, 0], [0, 0, 0, 1],
         [-1, 0, 0, 0], [0, -1, 0, 0], [0, 0, -1, 0], [0, 0, 0, -1],
         [0.7071, 0.7071, 0.0, 0.0], [0.7071, 0.0, 0.7071, 0.0],
         [0.7071, 0.0, 0.0, 0.7071], [0.0, 0.7071, 0.7071, 0.0],
         [0.0, 0.7071, 0.0, 0.7071], [0.0, 0.0, 0.7071, 0.7071],
         [0.7071, -0.7071, 0.0, 0.0], [0.7071, 0.0, -0.7071, 0.0],
         [0.7071, 0.0, 0.0, -0.7071], [0.0, 0.7071, -0.7071, 0.0],
         [0.0, 0.7071, 0.0, -0.7071], [0.0, 0.0, 0.7071, -0.7071],
         [-0.7071, 0.7071, 0.0, 0.0], [-0.7071, 0.0, 0.7071, 0.0],
         [-0.7071, 0.0, 0.0, 0.7071], [0.0, -0.7071, 0.7071, 0.0],
         [0.0, -0.7071, 0.0, 0.7071], [0.0, 0.0, -0.7071, 0.7071],
         [-0.7071, -0.7071, 0.0, 0.0], [-0.7071, 0.0, -0.7071, 0.0],
         [-0.7071, 0.0, 0.0, -0.7071], [0.0, -0.7071, -0.7071, 0.0],
         [0.0, -0.7071, 0.0, -0.7071], [0.0, 0.0, -0.7071, -0.7071]]
    return jnp.asarray(q, dtype=jnp.float32)


# ------------------------------ fused Pallas kernel ---------------------------
def fused_kernel(x_ref, w1f_ref, b1f_ref, w2_ref, b2_ref, wh_ref, bh_ref,
                 exyz_ref, canon_ref, o_ref):
    f32 = jnp.float32
    bf16 = jnp.bfloat16

    def sigmoid(v):
        # single EUP op (tanh) instead of exp + reciprocal; exact (no approx recip)
        return 0.5 * (jnp.tanh(0.5 * v) + 1.0)

    def silu(v):
        return v * sigmoid(v)

    # --- patch embed folded into the first MLP layer (GambaFormer == identity) ---
    # TODO(synk): GambaFormer (Mamba-based sequence mixer) is not defined in the
    # provided source; treated as identity, which is what makes this fold exact.
    h = silu(jnp.dot(x_ref[...], w1f_ref[...], preferred_element_type=f32)
             + b1f_ref[...])                                          # [T, 4D]
    f = silu(jnp.dot(h.astype(bf16), w2_ref[...], preferred_element_type=f32)
             + b2_ref[...])                                           # [T, D]

    # --- all five GS heads fused into ONE lane-dense [D,128] matmul ---
    lg = jnp.dot(f.astype(bf16), wh_ref[...], preferred_element_type=f32) + bh_ref[...]

    # xyz head: 3x 21-bin softmax expectation via ONE constant [63,6] matmul
    # (cols 0..2: sum(p*coord) per axis, cols 3..5: softmax normalizer per axis)
    xyz_logit = lg[:, _XYZ0:_XYZ1]
    e_xyz = jnp.exp(xyz_logit - jnp.max(xyz_logit, axis=-1, keepdims=True))
    mom = jnp.dot(e_xyz, exyz_ref[...], preferred_element_type=f32)   # [T, 6]
    xyz = mom[:, 0:3] * pl.reciprocal(mom[:, 3:6], approx=True)       # [T, 3]

    # opacity head: sigmoid
    opacity = sigmoid(lg[:, _OP0:_OP1])                               # [T, 1]

    # scale head: 0.1 * softplus (numerically stable form)
    s = lg[:, _SC0:_SC1]
    scale = 0.1 * (jnp.maximum(s, 0.0) + jnp.log(1.0 + jnp.exp(-jnp.abs(s))))

    # rot head: the softmax denominator cancels under L2 normalization, so only
    # the (max-shifted) exponentials feed the [32,4] canonical-quaternion matmul
    r = lg[:, _ROT0:_ROT1]
    e_rot = jnp.exp(r - jnp.max(r, axis=-1, keepdims=True))
    quat = jnp.dot(e_rot, canon_ref[...], preferred_element_type=f32)  # [T, 4]
    rot = quat * jax.lax.rsqrt(jnp.sum(quat * quat, axis=-1, keepdims=True) + 1e-24)

    # rgb head: sigmoid
    rgb = sigmoid(lg[:, _RGB0:_RGB1])                                  # [T, 3]

    out14 = jnp.concatenate([xyz, opacity, scale, rot, rgb], axis=-1)  # [T, 14]
    pad = jnp.zeros((out14.shape[0], OUT_PAD - out14.shape[1]), dtype=f32)
    # bf16 full-width store (unmasked 128-lane vst, half the HBM writeback)
    o_ref[...] = jnp.concatenate([out14, pad], axis=-1).astype(o_ref.dtype)


def _full_spec(arr):
    n = arr.ndim
    return pl.BlockSpec(arr.shape, lambda i, _n=n: (0,) * _n)


def _pick_tile(m):
    """Biggest row tile up to MAX_TILE; for small M split into >=2 blocks so the
    'parallel' grid axis can shard across v7x's two TensorCores."""
    if m >= 2 * MAX_TILE:
        return MAX_TILE
    half = -(-m // 2)
    half = -(-half // ROW_GRANULE) * ROW_GRANULE
    return max(ROW_GRANULE, min(half, MAX_TILE))


def fused_gs_decode(x_patches, params):
    """x_patches: [M, C*P*P] (bf16) -> padded GS params [M_pad, 128] bf16 (14 useful cols)."""
    M, K = x_patches.shape
    tile = _pick_tile(M)
    n_blk = pl.cdiv(M, tile)
    m_pad = n_blk * tile
    if m_pad != M:
        x_patches = jnp.pad(x_patches, ((0, m_pad - M), (0, 0)))
    weights = [params[k] for k in ("w1f", "b1f", "w2", "b2", "wh", "bh",
                                   "exyz", "canon")]
    # NOTE: constant-index weight blocks are double-buffered by default; at
    # ~40 KiB total that is negligible here, so the default pipelining is kept.
    return pl.pallas_call(
        fused_kernel,
        out_shape=jax.ShapeDtypeStruct((m_pad, OUT_PAD), jnp.bfloat16),
        grid=(n_blk,),
        in_specs=[pl.BlockSpec((tile, K), lambda i: (i, 0))]
                 + [_full_spec(w) for w in weights],
        out_specs=pl.BlockSpec((tile, OUT_PAD), lambda i: (i, 0)),
        compiler_params=pltpu.CompilerParams(dimension_semantics=("parallel",)),
    )(x_patches, *weights)


# ------------------------------ parameter init --------------------------------
def init_params(key):
    D = GAMBA_DIM
    C = 9 if PLUCKER_RAY else 3
    P = PATCH_SIZE
    kdim = C * P * P
    ks = jax.random.split(key, 9)

    # map_image Conv2d: trunc_normal(std=sqrt(1/fan_in)), zero bias
    std = math.sqrt(1.0 / kdim)
    conv_w = std * jax.random.truncated_normal(ks[0], -2.0, 2.0, (D, C, P, P), jnp.float32)
    we = jnp.transpose(conv_w.reshape(D, kdim), (1, 0))        # [C*P*P, D]
    be = jnp.zeros((1, D), jnp.float32)

    def torch_default(k, fan_in, shape):
        b = 1.0 / math.sqrt(fan_in)
        return jax.random.uniform(k, shape, jnp.float32, -b, b)

    def xavier(k, fan_in, fan_out, shape):
        b = math.sqrt(6.0 / (fan_in + fan_out))
        return jax.random.uniform(k, shape, jnp.float32, -b, b)

    hidden = 4 * D
    w1 = torch_default(ks[1], D, (D, hidden))
    b1 = torch_default(ks[2], D, (1, hidden))
    w2 = torch_default(ks[3], hidden, (hidden, D))
    b2 = torch_default(ks[4], hidden, (1, D))

    # Fold patch embed into the first MLP layer (f32 fold, then ONE bf16 cast).
    # Exact because the GambaFormer placeholder is the identity map.
    w1f = jnp.dot(we, w1)                                      # [C*P*P, 4D]
    b1f = jnp.dot(be, w1) + b1                                 # [1, 4D]

    # per-head weights (native PyTorch column order), fused into one [D,128] matrix
    wxyz = xavier(ks[5], D, 3 * N_COORD_BINS, (D, 3 * N_COORD_BINS))
    bxyz = jnp.zeros((1, 3 * N_COORD_BINS), jnp.float32)
    wop = torch_default(ks[6], D, (D, 1))
    bop = jnp.full((1, 1), math.log(INIT_DENSITY / (1.0 - INIT_DENSITY)), jnp.float32)
    wsc = torch_default(ks[7], D, (D, 3))
    bsc = jnp.full((1, 3), -1.8, jnp.float32)
    wrot = torch_default(ks[8], D, (D, N_QUAT))
    brot = jnp.zeros((1, N_QUAT), jnp.float32)
    wrgb = jnp.zeros((D, 3), jnp.float32)   # rgb layer init: weight 0, bias 0
    brgb = jnp.zeros((1, 3), jnp.float32)

    wh = jnp.concatenate([wxyz, wop, wsc, wrot, wrgb], axis=1)          # [D, 102]
    bh = jnp.concatenate([bxyz, bop, bsc, brot, brgb], axis=1)          # [1, 102]
    wh = jnp.pad(wh, ((0, 0), (0, HEAD_PAD - wh.shape[1])))
    bh = jnp.pad(bh, ((0, 0), (0, HEAD_PAD - bh.shape[1])))

    # constant "softmax expectation" matrix: for axis a, column a carries the
    # 21 coordinate-bin values and column 3+a carries ones (the normalizer).
    coords = np.linspace(-POS_BOUND, POS_BOUND, N_COORD_BINS, dtype=np.float32)
    exyz = np.zeros((3 * N_COORD_BINS, 6), dtype=np.float32)
    for a in range(3):
        exyz[a * N_COORD_BINS:(a + 1) * N_COORD_BINS, a] = coords
        exyz[a * N_COORD_BINS:(a + 1) * N_COORD_BINS, 3 + a] = 1.0

    canon = _canonical_quaternions()                                    # [32, 4]

    # MXU operands stored as bf16 (halves weight DMA); epilogue terms stay f32.
    return dict(
        w1f=w1f.astype(jnp.bfloat16), b1f=b1f,
        w2=w2.astype(jnp.bfloat16), b2=b2,
        wh=wh.astype(jnp.bfloat16), bh=bh,
        exyz=jnp.asarray(exyz), canon=canon)


# ------------------------------- forward pass ---------------------------------
def _scan_gather_index(NV, Hp, Wp):
    """Static map from the 4-scan-order token sequence to unique patch indices."""
    j = np.arange(Hp * Wp)
    s1 = j                                           # flatten(2)
    s2 = (j % Hp) * Wp + (j // Hp)                   # permute(0,1,3,2).flatten(2)
    s3 = (j // Wp) * Wp + (Wp - 1 - (j % Wp))        # flip(dims=[3]).flatten(2)
    s4 = (Hp - 1 - (j % Hp)) * Wp + (j // Hp)        # permute+flip .flatten(2)
    per_view = np.concatenate([s1, s2, s3, s4])      # [4*Hp*Wp]
    base = (np.arange(NV) * (Hp * Wp))[:, None]
    return (base + per_view[None, :]).reshape(-1).astype(np.int32)


def mvgamba_forward_gaussians(images, params):
    """images: [B, V, C, H, W] (NCHW per view) -> pred_gs: [B, gs_num, 14]."""
    bsz, cond_num, c, h, w = images.shape
    P = PATCH_SIZE
    Hp, Wp = h // P, w // P
    NV = bsz * cond_num

    # Conv2d(kernel=stride=P) == patchify (glue) + in-kernel matmul.
    # TODO(synk): at production resolutions this NCHW->patch transpose is an
    # extra HBM pass; accept NHWC upstream (or DMA-gather patches in-kernel)
    # to remove it.  Negligible at demo sizes.
    x = images.reshape(NV, c, h, w)
    xp = x.reshape(NV, c, Hp, P, Wp, P)
    xp = jnp.transpose(xp, (0, 2, 4, 1, 3, 5)).reshape(NV * Hp * Wp, c * P * P)
    xp = xp.astype(jnp.bfloat16)

    # One fused Pallas call: folded embed+MLP -> (identity mixer) -> GS heads.
    # The 4 scan orders are permutations of the same tokens and the decoder is
    # strictly per-token, so each unique token is decoded once; the lane-dense
    # bf16 [*,128] slab is gathered row-wise, then sliced to 14 columns.
    dec = fused_gs_decode(xp, params)                          # [M_pad, 128] bf16

    idx = jnp.asarray(_scan_gather_index(NV, Hp, Wp))          # static permutation
    gs = jnp.take(dec, idx, axis=0)                            # [NV*4*Hp*Wp, 128]
    gs = gs[:, :14].astype(jnp.float32)
    # reshape_upsample is identity for upsampler_type == 'none'
    return gs.reshape(bsz, cond_num * 4 * Hp * Wp, 14)


if __name__ == "__main__":
    key = jax.random.PRNGKey(0)
    kp, kx = jax.random.split(key)
    params = init_params(kp)
    images = jax.random.normal(kx, (2, NUM_VIEWS, 3, INPUT_SIZE, INPUT_SIZE), jnp.float32)

    gs = jax.jit(lambda imgs: mvgamba_forward_gaussians(imgs, params))(images)
    gs = jax.block_until_ready(gs)

    gs_num = (INPUT_SIZE // PATCH_SIZE) ** 2 * 4 * NUM_VIEWS
    assert gs.shape == (2, gs_num, 14), gs.shape
    assert bool(jnp.all(jnp.isfinite(gs)))
    print("KERNEL_OK")
</pallas_src>

<mosaic_0001>
module attributes {stable_mosaic.version = 11 : i64} {
  func.func @fused_kernel(%arg0: i32, %arg1: memref<32x192xbf16, #tpu.memory_space<vmem>>, %arg2: memref<192x128xbf16, #tpu.memory_space<vmem>>, %arg3: memref<1x128xf32, #tpu.memory_space<vmem>>, %arg4: memref<128x32xbf16, #tpu.memory_space<vmem>>, %arg5: memref<1x32xf32, #tpu.memory_space<vmem>>, %arg6: memref<32x128xbf16, #tpu.memory_space<vmem>>, %arg7: memref<1x128xf32, #tpu.memory_space<vmem>>, %arg8: memref<63x6xf32, #tpu.memory_space<vmem>>, %arg9: memref<32x4xf32, #tpu.memory_space<vmem>>, %arg10: memref<32x128xbf16, #tpu.memory_space<vmem>>) attributes {dimension_semantics = [#tpu.dimension_semantics<parallel>], iteration_bounds = array<i64: 2>, scalar_prefetch = 0 : i64, scratch_operands = 0 : i64, tpu.core_type = #tpu.core_type<tc>, window_params = [{transform_indices = @transform_0, window_bounds = array<i64: 32, 192>}, {pipeline_mode = #tpu.pipeline_mode<synchronous>, transform_indices = @transform_1, window_bounds = array<i64: 192, 128>}, {pipeline_mode = #tpu.pipeline_mode<synchronous>, transform_indices = @transform_2, window_bounds = array<i64: 1, 128>}, {pipeline_mode = #tpu.pipeline_mode<synchronous>, transform_indices = @transform_3, window_bounds = array<i64: 128, 32>}, {pipeline_mode = #tpu.pipeline_mode<synchronous>, transform_indices = @transform_4, window_bounds = array<i64: 1, 32>}, {pipeline_mode = #tpu.pipeline_mode<synchronous>, transform_indices = @transform_5, window_bounds = array<i64: 32, 128>}, {pipeline_mode = #tpu.pipeline_mode<synchronous>, transform_indices = @transform_6, window_bounds = array<i64: 1, 128>}, {pipeline_mode = #tpu.pipeline_mode<synchronous>, transform_indices = @transform_7, window_bounds = array<i64: 63, 6>}, {pipeline_mode = #tpu.pipeline_mode<synchronous>, transform_indices = @transform_8, window_bounds = array<i64: 32, 4>}, {transform_indices = @transform_9, window_bounds = array<i64: 32, 128>}]} {
    %c0 = arith.constant 0 : index
    %c0_0 = arith.constant 0 : index
    %0 = vector.load %arg1[%c0, %c0_0] : memref<32x192xbf16, #tpu.memory_space<vmem>>, vector<32x192xbf16>
    %c0_1 = arith.constant 0 : index
    %c0_2 = arith.constant 0 : index
    %1 = vector.load %arg2[%c0_1, %c0_2] : memref<192x128xbf16, #tpu.memory_space<vmem>>, vector<192x128xbf16>
    %cst = arith.constant dense<0.000000e+00> : vector<32x128xf32>
    %2 = tpu.matmul %0, %1, %cst {dimension_numbers = #tpu.dot_dimension_numbers<[1], [0], [0], [1], [0, 0, 1, 1], [], []>} : vector<32x192xbf16>, vector<192x128xbf16>, vector<32x128xf32> -> vector<32x128xf32>
    %c0_3 = arith.constant 0 : index
    %c0_4 = arith.constant 0 : index
    %3 = vector.load %arg3[%c0_3, %c0_4] : memref<1x128xf32, #tpu.memory_space<vmem>>, vector<1x128xf32>
    %4 = vector.broadcast %3 : vector<1x128xf32> to vector<32x128xf32>
    %5 = arith.addf %2, %4 : vector<32x128xf32>
    %cst_5 = arith.constant 5.000000e-01 : f32
    %6 = vector.broadcast %cst_5 : f32 to vector<32x128xf32>
    %7 = arith.mulf %6, %5 : vector<32x128xf32>
    %8 = math.tanh %7 : vector<32x128xf32>
    %cst_6 = arith.constant 1.000000e+00 : f32
    %9 = vector.broadcast %cst_6 : f32 to vector<32x128xf32>
    %10 = arith.addf %8, %9 : vector<32x128xf32>
    %cst_7 = arith.constant 5.000000e-01 : f32
    %11 = vector.broadcast %cst_7 : f32 to vector<32x128xf32>
    %12 = arith.mulf %11, %10 : vector<32x128xf32>
    %13 = arith.mulf %5, %12 : vector<32x128xf32>
    %14 = arith.truncf %13 : vector<32x128xf32> to vector<32x128xbf16>
    %c0_8 = arith.constant 0 : index
    %c0_9 = arith.constant 0 : index
    %15 = vector.load %arg4[%c0_8, %c0_9] : memref<128x32xbf16, #tpu.memory_space<vmem>>, vector<128x32xbf16>
    %cst_10 = arith.constant dense<0.000000e+00> : vector<32x32xf32>
    %16 = tpu.matmul %14, %15, %cst_10 {dimension_numbers = #tpu.dot_dimension_numbers<[1], [0], [0], [1], [0, 0, 1, 1], [], []>} : vector<32x128xbf16>, vector<128x32xbf16>, vector<32x32xf32> -> vector<32x32xf32>
    %c0_11 = arith.constant 0 : index
    %c0_12 = arith.constant 0 : index
    %17 = vector.load %arg5[%c0_11, %c0_12] : memref<1x32xf32, #tpu.memory_space<vmem>>, vector<1x32xf32>
    %18 = vector.broadcast %17 : vector<1x32xf32> to vector<32x32xf32>
    %19 = arith.addf %16, %18 : vector<32x32xf32>
    %cst_13 = arith.constant 5.000000e-01 : f32
    %20 = vector.broadcast %cst_13 : f32 to vector<32x32xf32>
    %21 = arith.mulf %20, %19 : vector<32x32xf32>
    %22 = math.tanh %21 : vector<32x32xf32>
    %cst_14 = arith.constant 1.000000e+00 : f32
    %23 = vector.broadcast %cst_14 : f32 to vector<32x32xf32>
    %24 = arith.addf %22, %23 : vector<32x32xf32>
    %cst_15 = arith.constant 5.000000e-01 : f32
    %25 = vector.broadcast %cst_15 : f32 to vector<32x32xf32>
    %26 = arith.mulf %25, %24 : vector<32x32xf32>
    %27 = arith.mulf %19, %26 : vector<32x32xf32>
    %28 = arith.truncf %27 : vector<32x32xf32> to vector<32x32xbf16>
    %c0_16 = arith.constant 0 : index
    %c0_17 = arith.constant 0 : index
    %29 = vector.load %arg6[%c0_16, %c0_17] : memref<32x128xbf16, #tpu.memory_space<vmem>>, vector<32x128xbf16>
    %cst_18 = arith.constant dense<0.000000e+00> : vector<32x128xf32>
    %30 = tpu.matmul %28, %29, %cst_18 {dimension_numbers = #tpu.dot_dimension_numbers<[1], [0], [0], [1], [0, 0, 1, 1], [], []>} : vector<32x32xbf16>, vector<32x128xbf16>, vector<32x128xf32> -> vector<32x128xf32>
    %c0_19 = arith.constant 0 : index
    %c0_20 = arith.constant 0 : index
    %31 = vector.load %arg7[%c0_19, %c0_20] : memref<1x128xf32, #tpu.memory_space<vmem>>, vector<1x128xf32>
    %32 = vector.broadcast %31 : vector<1x128xf32> to vector<32x128xf32>
    %33 = arith.addf %30, %32 : vector<32x128xf32>
    %34 = vector.extract_strided_slice %33 {offsets = [0, 0], sizes = [32, 63], strides = [1, 1]} : vector<32x128xf32> to vector<32x63xf32>
    %cst_21 = arith.constant dense<0xFF800000> : vector<32xf32>
    %35 = vector.multi_reduction <maximumf>, %34, %cst_21 [1] : vector<32x63xf32> to vector<32xf32>
    %36 = vector.shape_cast %35 : vector<32xf32> to vector<32x1xf32>
    %37 = vector.broadcast %36 : vector<32x1xf32> to vector<32x63xf32>
    %38 = arith.subf %34, %37 : vector<32x63xf32>
    %39 = math.exp %38 : vector<32x63xf32>
    %c0_22 = arith.constant 0 : index
    %c0_23 = arith.constant 0 : index
    %40 = vector.load %arg8[%c0_22, %c0_23] : memref<63x6xf32, #tpu.memory_space<vmem>>, vector<63x6xf32>
    %cst_24 = arith.constant dense<0.000000e+00> : vector<32x6xf32>
    %41 = tpu.matmul %39, %40, %cst_24 {dimension_numbers = #tpu.dot_dimension_numbers<[1], [0], [0], [1], [0, 0, 1, 1], [], []>} : vector<32x63xf32>, vector<63x6xf32>, vector<32x6xf32> -> vector<32x6xf32>
    %42 = vector.extract_strided_slice %41 {offsets = [0, 0], sizes = [32, 3], strides = [1, 1]} : vector<32x6xf32> to vector<32x3xf32>
    %43 = vector.extract_strided_slice %41 {offsets = [0, 3], sizes = [32, 3], strides = [1, 1]} : vector<32x6xf32> to vector<32x3xf32>
    %44 = tpu.reciprocal %43 {approx = true} : vector<32x3xf32> -> vector<32x3xf32>
    %45 = arith.mulf %42, %44 : vector<32x3xf32>
    %46 = vector.extract_strided_slice %33 {offsets = [0, 63], sizes = [32, 1], strides = [1, 1]} : vector<32x128xf32> to vector<32x1xf32>
    %cst_25 = arith.constant 5.000000e-01 : f32
    %47 = vector.broadcast %cst_25 : f32 to vector<32x1xf32>
    %48 = arith.mulf %47, %46 : vector<32x1xf32>
    %49 = math.tanh %48 : vector<32x1xf32>
    %cst_26 = arith.constant 1.000000e+00 : f32
    %50 = vector.broadcast %cst_26 : f32 to vector<32x1xf32>
    %51 = arith.addf %49, %50 : vector<32x1xf32>
    %cst_27 = arith.constant 5.000000e-01 : f32
    %52 = vector.broadcast %cst_27 : f32 to vector<32x1xf32>
    %53 = arith.mulf %52, %51 : vector<32x1xf32>
    %54 = vector.extract_strided_slice %33 {offsets = [0, 64], sizes = [32, 3], strides = [1, 1]} : vector<32x128xf32> to vector<32x3xf32>
    %cst_28 = arith.constant 0.000000e+00 : f32
    %55 = vector.broadcast %cst_28 : f32 to vector<32x3xf32>
    %56 = arith.maximumf %54, %55 : vector<32x3xf32>
    %57 = math.absf %54 : vector<32x3xf32>
    %cst_29 = arith.constant 0.000000e+00 : f32
    %58 = vector.broadcast %cst_29 : f32 to vector<32x3xf32>
    %59 = arith.subf %58, %57 : vector<32x3xf32>
    %60 = math.exp %59 : vector<32x3xf32>
    %cst_30 = arith.constant 1.000000e+00 : f32
    %61 = vector.broadcast %cst_30 : f32 to vector<32x3xf32>
    %62 = arith.addf %61, %60 : vector<32x3xf32>
    %63 = math.log %62 : vector<32x3xf32>
    %64 = arith.addf %56, %63 : vector<32x3xf32>
    %cst_31 = arith.constant 1.000000e-01 : f32
    %65 = vector.broadcast %cst_31 : f32 to vector<32x3xf32>
    %66 = arith.mulf %65, %64 : vector<32x3xf32>
    %67 = vector.extract_strided_slice %33 {offsets = [0, 67], sizes = [32, 32], strides = [1, 1]} : vector<32x128xf32> to vector<32x32xf32>
    %cst_32 = arith.constant dense<0xFF800000> : vector<32xf32>
    %68 = vector.multi_reduction <maximumf>, %67, %cst_32 [1] : vector<32x32xf32> to vector<32xf32>
    %69 = vector.shape_cast %68 : vector<32xf32> to vector<32x1xf32>
    %70 = vector.broadcast %69 : vector<32x1xf32> to vector<32x32xf32>
    %71 = arith.subf %67, %70 : vector<32x32xf32>
    %72 = math.exp %71 : vector<32x32xf32>
    %c0_33 = arith.constant 0 : index
    %c0_34 = arith.constant 0 : index
    %73 = vector.load %arg9[%c0_33, %c0_34] : memref<32x4xf32, #tpu.memory_space<vmem>>, vector<32x4xf32>
    %cst_35 = arith.constant dense<0.000000e+00> : vector<32x4xf32>
    %74 = tpu.matmul %72, %73, %cst_35 {dimension_numbers = #tpu.dot_dimension_numbers<[1], [0], [0], [1], [0, 0, 1, 1], [], []>} : vector<32x32xf32>, vector<32x4xf32>, vector<32x4xf32> -> vector<32x4xf32>
    %75 = arith.mulf %74, %74 : vector<32x4xf32>
    %cst_36 = arith.constant dense<0.000000e+00> : vector<32xf32>
    %76 = vector.multi_reduction <add>, %75, %cst_36 [1] : vector<32x4xf32> to vector<32xf32>
    %77 = vector.shape_cast %76 : vector<32xf32> to vector<32x1xf32>
    %cst_37 = arith.constant 1.000000e-24 : f32
    %78 = vector.broadcast %cst_37 : f32 to vector<32x1xf32>
    %79 = arith.addf %77, %78 : vector<32x1xf32>
    %80 = math.rsqrt %79 : vector<32x1xf32>
    %81 = vector.broadcast %80 : vector<32x1xf32> to vector<32x4xf32>
    %82 = arith.mulf %74, %81 : vector<32x4xf32>
    %83 = vector.extract_strided_slice %33 {offsets = [0, 99], sizes = [32, 3], strides = [1, 1]} : vector<32x128xf32> to vector<32x3xf32>
    %cst_38 = arith.constant 5.000000e-01 : f32
    %84 = vector.broadcast %cst_38 : f32 to vector<32x3xf32>
    %85 = arith.mulf %84, %83 : vector<32x3xf32>
    %86 = math.tanh %85 : vector<32x3xf32>
    %cst_39 = arith.constant 1.000000e+00 : f32
    %87 = vector.broadcast %cst_39 : f32 to vector<32x3xf32>
    %88 = arith.addf %86, %87 : vector<32x3xf32>
    %cst_40 = arith.constant 5.000000e-01 : f32
    %89 = vector.broadcast %cst_40 : f32 to vector<32x3xf32>
    %90 = arith.mulf %89, %88 : vector<32x3xf32>
    %91 = tpu.concatenate %45, %53, %66, %82, %90 in 1 : vector<32x3xf32>, vector<32x1xf32>, vector<32x3xf32>, vector<32x4xf32>, vector<32x3xf32> -> vector<32x14xf32>
    %cst_41 = arith.constant 0.000000e+00 : f32
    %92 = vector.broadcast %cst_41 : f32 to vector<32x114xf32>
    %93 = tpu.concatenate %91, %92 in 1 : vector<32x14xf32>, vector<32x114xf32> -> vector<32x128xf32>
    %94 = arith.truncf %93 : vector<32x128xf32> to vector<32x128xbf16>
    %c0_42 = arith.constant 0 : index
    %c0_43 = arith.constant 0 : index
    %95 = vector.load %arg10[%c0_42, %c0_43] : memref<32x128xbf16, #tpu.memory_space<vmem>>, vector<32x128xbf16>
    tpu.vector_store %arg10[%c0_42, %c0_43], %94 {strides = array<i32>} : memref<32x128xbf16, #tpu.memory_space<vmem>>, vector<32x128xbf16>,
    return
  }
  func.func @transform_0(%arg0: i32) -> (i32, i32) {
    %c0_i32 = arith.constant 0 : i32
    %c0_i32_0 = arith.constant 0 : i32
    return %arg0, %c0_i32 : i32, i32
  }
  func.func @transform_1(%arg0: i32) -> (i32, i32) {
    %c0_i32 = arith.constant 0 : i32
    %c0_i32_0 = arith.constant 0 : i32
    %c0_i32_1 = arith.constant 0 : i32
    return %c0_i32, %c0_i32_0 : i32, i32
  }
  func.func @transform_2(%arg0: i32) -> (i32, i32) {
    %c0_i32 = arith.constant 0 : i32
    %c0_i32_0 = arith.constant 0 : i32
    %c0_i32_1 = arith.constant 0 : i32
    return %c0_i32, %c0_i32_0 : i32, i32
  }
  func.func @transform_3(%arg0: i32) -> (i32, i32) {
    %c0_i32 = arith.constant 0 : i32
    %c0_i32_0 = arith.constant 0 : i32
    %c0_i32_1 = arith.constant 0 : i32
    return %c0_i32, %c0_i32_0 : i32, i32
  }
  func.func @transform_4(%arg0: i32) -> (i32, i32) {
    %c0_i32 = arith.constant 0 : i32
    %c0_i32_0 = arith.constant 0 : i32
    %c0_i32_1 = arith.constant 0 : i32
    return %c0_i32, %c0_i32_0 : i32, i32
  }
  func.func @transform_5(%arg0: i32) -> (i32, i32) {
    %c0_i32 = arith.constant 0 : i32
    %c0_i32_0 = arith.constant 0 : i32
    %c0_i32_1 = arith.constant 0 : i32
    return %c0_i32, %c0_i32_0 : i32, i32
  }
  func.func @transform_6(%arg0: i32) -> (i32, i32) {
    %c0_i32 = arith.constant 0 : i32
    %c0_i32_0 = arith.constant 0 : i32
    %c0_i32_1 = arith.constant 0 : i32
    return %c0_i32, %c0_i32_0 : i32, i32
  }
  func.func @transform_7(%arg0: i32) -> (i32, i32) {
    %c0_i32 = arith.constant 0 : i32
    %c0_i32_0 = arith.constant 0 : i32
    %c0_i32_1 = arith.constant 0 : i32
    return %c0_i32, %c0_i32_0 : i32, i32
  }
  func.func @transform_8(%arg0: i32) -> (i32, i32) {
    %c0_i32 = arith.constant 0 : i32
    %c0_i32_0 = arith.constant 0 : i32
    %c0_i32_1 = arith.constant 0 : i32
    return %c0_i32, %c0_i32_0 : i32, i32
  }
  func.func @transform_9(%arg0: i32) -> (i32, i32) {
    %c0_i32 = arith.constant 0 : i32
    %c0_i32_0 = arith.constant 0 : i32
    return %arg0, %c0_i32 : i32, i32
  }
}

</mosaic_0001>

<bundles_post_ra>
// kernel: _lambda_.1
= control target key start
LH: loop header
LB: loop body
LE: loop exit
PB: predicated region body
PF: predicated region fallthrough
CT: control target
= control target key end

     0   :  { %s1495_s30 = smov 0   ;;  %s1753_s0 = inlined_call_operand.vmem [shape: bf16[64,192], index: 0, kind: input, shape index: {}]   ;;  %s1754_s1 = inlined_call_operand.vmem [shape: bf16[192,128], index: 1, kind: input, shape index: {}]   ;;  %s1755_s2 = inlined_call_operand.vmem [shape: f32[1,128], index: 2, kind: input, shape index: {}]   ;;  %s1756_s3 = inlined_call_operand.vmem [shape: bf16[128,32], index: 3, kind: input, shape index: {}]   ;;  %s1757_s4 = inlined_call_operand.vmem [shape: f32[1,32], index: 4, kind: input, shape index: {}]   ;;  %s1758_s5 = inlined_call_operand.vmem [shape: bf16[32,128], index: 5, kind: input, shape index: {}]   ;;  %s1759_s6 = inlined_call_operand.vmem [shape: f32[1,128], index: 6, kind: input, shape index: {}]   ;;  %s1760_s7 = inlined_call_operand.vmem [shape: f32[63,6], index: 7, kind: input, shape index: {}]   ;;  %s1761_s8 = inlined_call_operand.vmem [shape: f32[32,4], index: 8, kind: input, shape index: {}]   ;;  %s1762_s9 = inlined_call_operand.vmem [shape: bf16[64,128], index: 9, kind: output, shape index: {}]  }
   0x1 LB: > { %s1133_s10 = sadd.s32 4294967295, %s1438_s30   ;;  %p1137_p0 = scmp.ge.s32.totalorder %s1438_s30, 1  ;;  %s1438_s30 = sphi %s1495_s30, %s19_s30  }
   0x2   : > { %p289_p1 = scmp.lt.s32.totalorder %s1438_s30, 3 }
   0x4   : > { %p290_p2 = pnand %p1137_p0, %p289_p1 }
   0x5   : > { %s1138_s13 = sshll.u32 (!%p290_p2), %s1133_s10, 2  ;;  %s1440_s29 = smov (!%p290_p2), 61  }
   0x6   : > { %293 = sbr.rel (%p290_p2) target bundleno = 1150 (0x47e), region = 56  ;;  %p327_p3 = scmp.lt.s32.totalorder (!%p290_p2), %s1138_s13, 7 }
   0x7   : > { %s1441_s15 = smov (!%p290_p2), 125   ;;  %s1442_s16 = smov (!%p290_p2), 68  }
   0x8   : > { %s1443_s17 = smov (!%p290_p2), 40   ;;  %s1444_s18 = smov (!%p290_p2), 7  }
   0xb   : > { %v1274_v0 = vld [vmem:[%s1754_s1 + $0x38] sm:$0xff]  ;;  %v1273_v2 = vld [vmem:[%s1754_s1 + $0x30] sm:$0xff]  ;;  %s1764_s13 = smov (!%p327_p3, %s1138_s13), 7  ;;  %v1272_v4 = vld [vmem:[%s1754_s1 + $0x28] sm:$0xff]  ;;  %vm462_vm0 = vcmask 523264   ;;  %vm658_vm1 = vcmask 261120  }
   0xc   : > { %v1278_v1 = vld [vmem:[%s1754_s1 + $0x58] sm:$0xff]  ;;  %469 = vmatpush.bf16.msra.mxu0 %v1274_v0  ;;  %v1277_v3 = vld [vmem:[%s1754_s1 + $0x50] sm:$0xff]  ;;  %s1262_s20 = sshll.u32 %s1764_s13, 3  ;;  %v1276_v5 = vld [vmem:[%s1754_s1 + $0x48] sm:$0xff]  ;;  %vm842_vm2 = vcmask 810520   ;;  %vm684_vm3 = vcmask 515072  }
   0xd   : > { %492 = vmatpush.bf16.msra.mxu1 %v1278_v1  ;;  %s331_s27 = scalar_lea.vmem %s1753_s0, %s1262_s20  ;;  %v1271_v6 = vld [vmem:[%s1754_s1 + $0x20] sm:$0xff]  ;;  %v1270_v10 = vld [vmem:[%s1754_s1 + $0x18] sm:$0xff]  ;;  %v1269_v12 = vld [vmem:[%s1754_s1 + $0x10] sm:$0xff]  ;;  %vm729_vm4 = vcmask 1046528   ;;  %vm924_vm5 = vcmask 31744   ;;  %s1142_s19 = sshll.u32 %s1764_s13, 2 }
   0xe   : > { %v1275_v7 = vld [vmem:[%s1754_s1 + $0x40] sm:$0xff]  ;;  %v1147_v9 = vld [vmem:[%s331_s27 + $0x8] sm:$0xf0]  ;;  %v1264_v16 = vld [vmem:[%s331_s27 + $0x4] sm:$0xf0]  ;;  %s337_s22 = scalar_lea.vmem %s1762_s9, %s1142_s19 }
   0xf   : > { %v1263_v8 = vld [vmem:[%s331_s27 + $0x4] sm:$0xf]  ;;  %v1268_v13 = vld [vmem:[%s1754_s1 + $0x8] sm:$0xff]  ;;  %v1145_v15 = vld [vmem:[%s331_s27] sm:$0xf] }
  0x10   : > { %470 = vmatpush.bf16.msra.mxu0 %v1273_v2  ;;  %v1150_v11 = vor.u32 %v1263_v8, %v1147_v9  ;;  %v1267_v14 = vld [vmem:[%s1754_s1] sm:$0xff]  ;;  %v1265_v17 = vld [vmem:[%s331_s27 + $0x14] sm:$0xf]  ;;  %v1155_v18 = vld [vmem:[%s331_s27 + $0x18] sm:$0xf0]  ;;  %v1146_v19 = vor.u32 %v1264_v16, %v1145_v15 }
  0x11   : > { %493 = vmatpush.bf16.msra.mxu1 %v1277_v3  ;;  %v1158_v20 = vor.u32 %v1265_v17, %v1155_v18  ;;  %v1153_v21 = vld [vmem:[%s331_s27 + $0x10] sm:$0xf]  ;;  %v1266_v22 = vld [vmem:[%s331_s27 + $0x14] sm:$0xf0]  ;;  %v1284_v26 = vld [vmem:[%s1756_s3 + $0x28] sm:$0xff] }
  0x12   : > { %v1154_v23 = vor.u32 %v1266_v22, %v1153_v21  ;;  %v1286_v24 = vld [vmem:[%s1756_s3 + $0x38] sm:$0xff]  ;;  %v1285_v25 = vld [vmem:[%s1756_s3 + $0x30] sm:$0xff]  ;;  %v1283_v27 = vld [vmem:[%s1756_s3 + $0x20] sm:$0xff] }
  0x13   : > { %597 = vmatpush.bf16.msra.mxu2 %v1286_v24  ;;  %v1282_v28 = vld [vmem:[%s1756_s3 + $0x18] sm:$0xff]  ;;  %v1281_v29 = vld [vmem:[%s1756_s3 + $0x10] sm:$0xff]  ;;  %v1280_v30 = vld [vmem:[%s1756_s3 + $0x8] sm:$0xff] }
  0x14   : > { %471 = vmatpush.bf16.msra.mxu0 %v1272_v4  ;;  %v1279_v31 = vld [vmem:[%s1756_s3] sm:$0xff] }
  0x15   : > { %494 = vmatpush.bf16.msra.mxu1 %v1276_v5  ;;  %v1357_v33 = vld [vmem:[%s1755_s2] ss:$0 sm:$0xff] }
  0x16   : > { %v1287_v8 = vld [vmem:[%s1758_s5] sm:$0xff] }
  0x17   : > { %598 = vmatpush.bf16.msra.mxu2 %v1285_v25  ;;  %v1358_v9 = vld [vmem:[%s1757_s4] ss:$0 sm:$0xff] }
  0x18   : > { %472 = vmatpush.bf16.msra.mxu0 %v1271_v6 }
  0x19   : > { %495 = vmatpush.bf16.msra.mxu1 %v1275_v7  ;;  %v1288_v7 = vld [vmem:[%s1758_s5 + $0x8] sm:$0xff] }
  0x1a   : > { %671 = vmatpush.bf16.msra.mxu3 %v1288_v7  ;;  %v868_v7 = vld [vmem:[%s1761_s8 + $0x8] sm:$0xff] }
  0x1b   : > { %599 = vmatpush.bf16.msra.mxu2 %v1284_v26 }
  0x1c   : > { %473 = vmatpush.bf16.msra.mxu0 %v1270_v10  ;;  %1207 = vmatmul.msk.bf16.vlgmr.msra.gmra.mxu1 %vm462_vm0, %v1150_v11 }
  0x1e   : > { %672 = vmatpush.bf16.msra.mxu3 %v1287_v8  ;;  %v867_v8 = vld [vmem:[%s1761_s8] sm:$0xff] }
  0x1f   : > { %600 = vmatpush.bf16.msra.mxu2 %v1283_v27 }
  0x20   : > { %474 = vmatpush.bf16.msra.mxu0 %v1269_v12 }
  0x23   : > { %601 = vmatpush.bf16.msra.mxu2 %v1282_v28 }
  0x24   : > { %475 = vmatpush.bf16.msra.mxu0 %v1268_v13 }
  0x27   : > { %602 = vmatpush.bf16.msra.mxu2 %v1281_v29 }
  0x28   : > { %476 = vmatpush.bf16.msra.mxu0 %v1267_v14 }
  0x2b   : > { %477 = vmatmul.bf16.vlgmr.msra.gmra.mxu0 %v1146_v19  ;;  %603 = vmatpush.bf16.msra.mxu2 %v1280_v30 }
  0x2c   : > { %1208 = vmatmul.msk.bf16.gmra.mxu1 %vm462_vm0, %v1158_v20 }
  0x2f   : > { %604 = vmatpush.bf16.msra.mxu2 %v1279_v31 }
  0x3b   : > { %482 = vmatmul.bf16.gmra.mxu0 %v1154_v23 }
  0x99   : > { %v497_v32 = vpop.f32.mrf.mxu1 }
  0xa1   : > { %v499_v38 = vpop.f32.mrf.mxu1 }
  0xa8   : > { %v478_v34 = vpop.f32.mrf.mxu0 }
  0xa9   : > { %v479_v35 = vadd.f32 %v1357_v33, %v478_v34  ;;  %v502_v44 = vpop.f32.mrf.mxu1 }
  0xab   : > { %v498_v36 = vadd.f32 %v497_v32, %v479_v35 }
  0xad   : > { %v507_v37 = vmul.f32 0.5, %v498_v36 }
  0xaf   : > { %1360 = vtanh.f32 %v507_v37 }
  0xb0   : > { %v480_v39 = vpop.f32.mrf.mxu0 }
  0xb1   : > { %v481_v40 = vadd.f32 %v1357_v33, %v480_v39  ;;  %v504_v56 = vpop.f32.mrf.mxu1 }
  0xb3   : > { %v500_v41 = vadd.f32 %v499_v38, %v481_v40  ;;  %v1359_v40 = vld [vmem:[%s1759_s6] ss:$0 sm:$0xff] }
  0xb5   : > { %v508_v42 = vmul.f32 0.5, %v500_v41  ;;  %v1361_v43 = vpop.eup %1360 }
  0xb6   : > { %v515_v47 = vadd.f32 1.0, %v1361_v43 }
  0xb7   : > { %1362 = vtanh.f32 %v508_v42 }
  0xb8   : > { %v483_v45 = vpop.f32.mrf.mxu0  ;;  %v519_v52 = vmul.f32 0.5, %v515_v47 }
  0xb9   : > { %v484_v46 = vadd.f32 %v1357_v33, %v483_v45 }
  0xba   : > { %v523_v57 = vmul.f32 %v519_v52, %v498_v36 }
  0xbb   : > { %v503_v48 = vadd.f32 %v502_v44, %v484_v46 }
  0xbd   : > { %v1363_v49 = vpop.eup %1362  ;;  %v509_v50 = vmul.f32 0.5, %v503_v48 }
  0xbe   : > { %v516_v51 = vadd.f32 1.0, %v1363_v49 }
  0xbf   : > { %1364 = vtanh.f32 %v509_v50 }
  0xc0   : > { %v485_v53 = vpop.f32.mrf.mxu0  ;;  %v520_v54 = vmul.f32 0.5, %v516_v51 }
  0xc1   : > { %v486_v55 = vadd.f32 %v1357_v33, %v485_v53 }
  0xc2   : > { %v524_v58 = vmul.f32 %v520_v54, %v500_v41 }
  0xc3   : > { %v505_v59 = vadd.f32 %v504_v56, %v486_v55 }
  0xc4   : > { %v527_v60 = vpack.c.bf16 %v524_v58, %v523_v57 }
  0xc5   : > { %v510_v61 = vmul.f32 0.5, %v505_v59  ;;  %v1365_v62 = vpop.eup %1364 }
  0xc6   : > { %605 = vmatmul.bf16.vlgmr.msra.gmra.mxu2 %v527_v60  ;;  %v517_v63 = vadd.f32 1.0, %v1365_v62 }
  0xc7   : > { %1366 = vtanh.f32 %v510_v61 }
  0xc8   : > { %v521_v2 = vmul.f32 0.5, %v517_v63 }
  0xca   : > { %v525_v4 = vmul.f32 %v521_v2, %v503_v48 }
  0xcd   : > { %v1367_v0 = vpop.eup %1366 }
  0xce   : > { %v518_v1 = vadd.f32 1.0, %v1367_v0 }
  0xd0   : > { %v522_v3 = vmul.f32 0.5, %v518_v1 }
  0xd2   : > { %v526_v5 = vmul.f32 %v522_v3, %v505_v59 }
  0xd4   : > { %v528_v6 = vpack.c.bf16 %v526_v5, %v525_v4  ;;  %v870_v5 = vld [vmem:[%s1761_s8 + $0x18] sm:$0xff] }
  0xd5   : > { %903 = vmatpush.msrb.mxu0 %v870_v5  ;;  %1300 = vmatpush.msrb.mxu1 %v870_v5 }
  0xd6   : > { %610 = vmatmul.bf16.gmra.mxu2 %v528_v6  ;;  %v869_v6 = vld [vmem:[%s1761_s8 + $0x10] sm:$0xff] }
  0xd7   : > { %1301 = vmatpush.msrb.mxu1 %v869_v6  ;;  %904 = vmatpush.msrb.mxu0 %v869_v6 }
  0xd9   : > { %1302 = vmatpush.msrb.mxu1 %v868_v7  ;;  %905 = vmatpush.msrb.mxu0 %v868_v7 }
  0xdb   : > { %1303 = vmatpush.msrb.mxu1 %v867_v8  ;;  %906 = vmatpush.msrb.mxu0 %v867_v8 }
 0x149   : > { %v606_v10 = vpop.f32.mrf.mxu2 }
 0x14a   : > { %v607_v11 = vadd.f32 %v1358_v9, %v606_v10 }
 0x14c   : > { %v616_v12 = vmul.f32 0.5, %v607_v11 }
 0x14e   : > { %1368 = vtanh.f32 %v616_v12 }
 0x151   : > { %v608_v13 = vpop.f32.mrf.mxu2 }
 0x152   : > { %v609_v14 = vadd.f32 %v1358_v9, %v608_v13 }
 0x154   : > { %v617_v15 = vmul.f32 0.5, %v609_v14  ;;  %v1369_v16 = vpop.eup %1368 }
 0x155   : > { %v624_v17 = vadd.f32 1.0, %v1369_v16  ;;  %v716_v16 = vld [vmem:[%s1760_s7 + $0x38] sm:$0x7f] }
 0x156   : > { %1370 = vtanh.f32 %v617_v15  ;;  %1251 = vmatpush.msk.msrb.mxu3 %vm729_vm4, %v716_v16  ;;  %vm1059_vm4 = vcmask 89088  }
 0x157   : > { %v628_v22 = vmul.f32 0.5, %v624_v17  ;;  %v715_v17 = vld [vmem:[%s1760_s7 + $0x30] sm:$0xff] }
 0x158   : > { %742 = vmatpush.msrb.mxu3 %v715_v17 }
 0x159   : > { %v611_v18 = vpop.f32.mrf.mxu2  ;;  %v632_v25 = vmul.f32 %v628_v22, %v607_v11  ;;  %v711_v22 = vld [vmem:[%s1760_s7 + $0x10] sm:$0xff] }
 0x15a   : > { %v612_v19 = vadd.f32 %v1358_v9, %v611_v18 }
 0x15c   : > { %v1371_v20 = vpop.eup %1370  ;;  %v618_v21 = vmul.f32 0.5, %v612_v19 }
 0x15d   : > { %v625_v23 = vadd.f32 1.0, %v1371_v20  ;;  %v713_v20 = vld [vmem:[%s1760_s7 + $0x20] sm:$0xff] }
 0x15e   : > { %1372 = vtanh.f32 %v618_v21  ;;  %v712_v21 = vld [vmem:[%s1760_s7 + $0x18] sm:$0xff] }
 0x15f   : > { %v629_v24 = vmul.f32 0.5, %v625_v23  ;;  %v710_v23 = vld [vmem:[%s1760_s7 + $0x8] sm:$0xff] }
 0x161   : > { %v633_v26 = vmul.f32 %v629_v24, %v609_v14  ;;  %v613_v27 = vpop.f32.mrf.mxu2  ;;  %v709_v24 = vld [vmem:[%s1760_s7] sm:$0xff] }
 0x162   : > { %v614_v28 = vadd.f32 %v1358_v9, %v613_v27 }
 0x163   : > { %v636_v29 = vpack.c.bf16 %v633_v26, %v632_v25 }
 0x164   : > { %v619_v30 = vmul.f32 0.5, %v614_v28  ;;  %v1373_v31 = vpop.eup %1372 }
 0x165   : > { %1249 = vmatmul.msk.bf16.vlgmr.msra.gmra.mxu3 %vm658_vm1, %v636_v29  ;;  %v626_v32 = vadd.f32 1.0, %v1373_v31 }
 0x166   : > { %1374 = vtanh.f32 %v619_v30 }
 0x167   : > { %v630_v34 = vmul.f32 0.5, %v626_v32 }
 0x169   : > { %v634_v37 = vmul.f32 %v630_v34, %v612_v19  ;;  %v714_v19 = vld [vmem:[%s1760_s7 + $0x28] sm:$0xff] }
 0x16a   : > { %743 = vmatpush.msrb.mxu3 %v714_v19 }
 0x16c   : > { %v1375_v33 = vpop.eup %1374  ;;  %744 = vmatpush.msrb.mxu3 %v713_v20 }
 0x16d   : > { %v627_v35 = vadd.f32 1.0, %v1375_v33 }
 0x16e   : > { %745 = vmatpush.msrb.mxu3 %v712_v21 }
 0x16f   : > { %v631_v36 = vmul.f32 0.5, %v627_v35 }
 0x170   : > { %746 = vmatpush.msrb.mxu3 %v711_v22 }
 0x171   : > { %v635_v38 = vmul.f32 %v631_v36, %v614_v28 }
 0x172   : > { %747 = vmatpush.msrb.mxu3 %v710_v23 }
 0x173   : > { %v637_v39 = vpack.c.bf16 %v635_v38, %v634_v37 }
 0x174   : > { %748 = vmatpush.msrb.mxu3 %v709_v24 }
 0x175   : > { %1250 = vmatmul.msk.bf16.gmra.mxu3 %vm658_vm1, %v637_v39 }
 0x1e8   : > { %v674_v41 = vpop.f32.mrf.mxu3 }
 0x1e9   : > { %v1588_v42 = vadd.f32 %v1359_v40, %v674_v41 }
 0x1eb   : > { %v843_v43 = vsel %vm842_vm2, %v1588_v42, -inf  ;;  %v685_v10 = vsel %vm684_vm3, %v1588_v42, -inf }
 0x1ec   : > { %844 = vmax.xlane.f32.xlu1 %v843_v43 }
 0x1f0   : > { %v676_v44 = vpop.f32.mrf.mxu3 }
 0x1f1   : > { %v1591_v45 = vadd.f32 %v1359_v40, %v676_v44 }
 0x1f3   : > { %v846_v46 = vsel %vm842_vm2, %v1591_v45, -inf  ;;  %v688_v9 = vsel %vm684_vm3, %v1591_v45, -inf }
 0x1f4   : > { %847 = vmax.xlane.f32.xlu0 %v846_v46 }
 0x1f8   : > { %v679_v47 = vpop.f32.mrf.mxu3 }
 0x1f9   : > { %v1594_v48 = vadd.f32 %v1359_v40, %v679_v47 }
 0x1fb   : > { %v849_v49 = vsel %vm842_vm2, %v1594_v48, -inf  ;;  %v691_v12 = vsel %vm684_vm3, %v1594_v48, -inf  ;;  %v788_v24 = vmul.f32 0.5, %v1594_v48 }
 0x1fc   : > { %850 = vmax.xlane.f32.xlu0 %v849_v49 }
 0x200   : > { %v681_v50 = vpop.f32.mrf.mxu3 }
 0x201   : > { %v1597_v51 = vadd.f32 %v1359_v40, %v681_v50 }
 0x203   : > { %v852_v52 = vsel %vm842_vm2, %v1597_v51, -inf  ;;  %v694_v11 = vsel %vm684_vm3, %v1597_v51, -inf  ;;  %v789_v20 = vmul.f32 0.5, %v1597_v51  ;;  %vm1045_vm2 = vcmask 23552  }
 0x204   : > { %853 = vmax.xlane.f32.xlu1 %v852_v52 }
 0x25f   : > { %v845_v53 = vpop.xlane.xlu1 %844 }
 0x260   : > { %v855_v54 = vsub.f32 %v1588_v42, %v845_v53 }
 0x262   : > { %v859_v55 = vmul.f32 1.442695, %v855_v54 }
 0x264   : > { %1376 = vpow2.f32 %v859_v55 }
 0x267   : > { %v848_v56 = vpop.xlane.xlu0 %847 }
 0x268   : > { %v856_v57 = vsub.f32 %v1591_v45, %v848_v56 }
 0x26a   : > { %v1377_v58 = vpop.eup %1376  ;;  %v861_v59 = vmul.f32 1.442695, %v856_v57  ;;  %v809_v57 = vand.u32 2147483647, %v1597_v51 }
 0x26b   : > { %875 = vrot.lane.b32.xlu0 %v1377_v58, %s1440_s29  ;;  %v808_v58 = vand.u32 2147483647, %v1594_v48 }
 0x26c   : > { %1378 = vpow2.f32 %v861_v59  ;;  %v813_v59 = vsub.f32 0.0, %v809_v57  ;;  %v803_v57 = vmax.f32 %v1591_v45, 0.0 }
 0x26f   : > { %v851_v60 = vpop.xlane.xlu0 %850 }
 0x270   : > { %v857_v61 = vsub.f32 %v1594_v48, %v851_v60  ;;  %v812_v60 = vsub.f32 0.0, %v808_v58 }
 0x272   : > { %v1379_v62 = vpop.eup %1378  ;;  %v863_v63 = vmul.f32 1.442695, %v857_v61  ;;  %v820_v61 = vmul.f32 1.442695, %v813_v59 }
 0x273   : > { %877 = vrot.lane.b32.xlu2 %v1379_v62, %s1440_s29  ;;  %v818_v62 = vmul.f32 1.442695, %v812_v60 }
 0x274   : > { %1380 = vpow2.f32 %v863_v63 }
 0x277   : > { %v854_v0 = vpop.xlane.xlu1 %853 }
 0x278   : > { %v858_v1 = vsub.f32 %v1597_v51, %v854_v0  ;;  %v787_v0 = vmul.f32 0.5, %v1591_v45 }
 0x27a   : > { %v1381_v2 = vpop.eup %1380  ;;  %v865_v3 = vmul.f32 1.442695, %v858_v1  ;;  %v807_v1 = vand.u32 2147483647, %v1591_v45 }
 0x27b   : > { %879 = vrot.lane.b32.xlu2 %v1381_v2, %s1440_s29  ;;  %v786_v2 = vmul.f32 0.5, %v1588_v42 }
 0x27c   : > { %1382 = vpow2.f32 %v865_v3  ;;  %v806_v3 = vand.u32 2147483647, %v1588_v42  ;;  %v811_v6 = vsub.f32 0.0, %v807_v1 }
 0x27e   : > { %v810_v8 = vsub.f32 0.0, %v806_v3 }
 0x282   : > { %v1383_v4 = vpop.eup %1382 }
 0x283   : > { %881 = vrot.lane.b32.xlu1 %v1383_v4, %s1440_s29 }
 0x295   : > { %689 = vmax.xlane.f32.xlu0 %v688_v9 }
 0x2a4   : > { %686 = vmax.xlane.f32.xlu2 %v685_v10  ;;  %v816_v10 = vmul.f32 1.442695, %v811_v6 }
 0x2ac   : > { %695 = vmax.xlane.f32.xlu2 %v694_v11 }
 0x2ad   : > { %692 = vmax.xlane.f32.xlu1 %v691_v12  ;;  %v814_v12 = vmul.f32 1.442695, %v810_v8 }
 0x2cd   : > { %v878_v13 = vpop.permute.xlu2 %877 }
 0x2ce   : > { %1257 = vmatmul.msk.f32.vlgmr.msrb.gmra.mxu1 %vm658_vm1, %v878_v13 }
 0x2d5   : > { %v880_v14 = vpop.permute.xlu2 %879 }
 0x2d6   : > { %1258 = vmatmul.msk.f32.gmra.mxu1 %vm658_vm1, %v880_v14 }
 0x2dd   : > { %v876_v15 = vpop.permute.xlu0 %875 }
 0x2de   : > { %1256 = vmatmul.msk.f32.vlgmr.msrb.gmra.mxu0 %vm658_vm1, %v876_v15 }
 0x2f5   : > { %v882_v18 = vpop.permute.xlu1 %881 }
 0x2f6   : > { %1259 = vmatmul.msk.f32.gmra.mxu1 %vm658_vm1, %v882_v18 }
 0x308   : > { %v690_v27 = vpop.xlane.xlu0 %689 }
 0x309   : > { %v698_v29 = vsub.f32 %v1591_v45, %v690_v27 }
 0x30b   : > { %v703_v30 = vmul.f32 1.442695, %v698_v29 }
 0x317   : > { %v687_v25 = vpop.xlane.xlu2 %686 }
 0x318   : > { %v697_v26 = vsub.f32 %v1588_v42, %v687_v25 }
 0x31a   : > { %v701_v28 = vmul.f32 1.442695, %v697_v26  ;;  %v805_v26 = vmax.f32 %v1597_v51, 0.0 }
 0x31c   : > { %1384 = vpow2.f32 %v701_v28 }
 0x31d   : > { %1386 = vpow2.f32 %v703_v30  ;;  %v804_v30 = vmax.f32 %v1594_v48, 0.0 }
 0x31f   : > { %v696_v35 = vpop.xlane.xlu2 %695 }
 0x320   : > { %v693_v31 = vpop.xlane.xlu1 %692  ;;  %v700_v37 = vsub.f32 %v1597_v51, %v696_v35 }
 0x321   : > { %v699_v33 = vsub.f32 %v1594_v48, %v693_v31 }
 0x322   : > { %v1385_v32 = vpop.eup %1384  ;;  %v707_v38 = vmul.f32 1.442695, %v700_v37 }
 0x323   : > { %1252 = vmatmul.msk.f32.vlgmr.msrb.gmra.mxu3 %vm684_vm3, %v1385_v32  ;;  %v705_v34 = vmul.f32 1.442695, %v699_v33  ;;  %v1387_v36 = vpop.eup %1386 }
 0x325   : > { %1388 = vpow2.f32 %v705_v34 }
 0x326   : > { %1390 = vpow2.f32 %v707_v38 }
 0x327   : > { %1392 = vpow2.f32 %v820_v61  ;;  %v802_v61 = vmax.f32 %v1588_v42, 0.0 }
 0x328   : > { %1394 = vpow2.f32 %v818_v62 }
 0x329   : > { %1396 = vtanh.f32 %v787_v0 }
 0x32a   : > { %1398 = vtanh.f32 %v786_v2 }
 0x32b   : > { %1253 = vmatmul.msk.f32.gmra.mxu3 %vm684_vm3, %v1387_v36  ;;  %v1389_v39 = vpop.eup %1388 }
 0x32c   : > { %v1391_v40 = vpop.eup %1390 }
 0x32d   : > { %v1393_v63 = vpop.eup %1392 }
 0x32e   : > { %v1395_v4 = vpop.eup %1394  ;;  %v825_v5 = vadd.f32 1.0, %v1393_v63 }
 0x32f   : > { %v824_v7 = vadd.f32 1.0, %v1395_v4  ;;  %v1397_v11 = vpop.eup %1396 }
 0x330   : > { %1400 = vlog2.f32 %v825_v5  ;;  %v1399_v13 = vpop.eup %1398  ;;  %v795_v15 = vadd.f32 1.0, %v1397_v11 }
 0x331   : > { %v794_v18 = vadd.f32 1.0, %v1399_v13 }
 0x332   : > { %v799_v21 = vmul.f32 0.5, %v795_v15 }
 0x333   : > { %1254 = vmatmul.msk.f32.gmra.mxu3 %vm684_vm3, %v1389_v39  ;;  %v798_v25 = vmul.f32 0.5, %v794_v18 }
 0x335   : > { %v1317_v29 = vpack.i.bf16 %v799_v21, %v798_v25 }
 0x336   : > { %v1401_v14 = vpop.eup %1400 }
 0x337   : > { %v833_v22 = vmul.f32 0.6931472, %v1401_v14 }
 0x339   : > { %v837_v31 = vadd.f32 %v833_v22, %v805_v26 }
 0x33b   : > { %1255 = vmatmul.msk.f32.gmra.mxu3 %vm684_vm3, %v1391_v40  ;;  %v841_v51 = vmul.f32 0.1, %v837_v31  ;;  %vm1054_vm3 = vcmask 56320  }
 0x34b   : > { %v1660_v41 = vpop.f32.mrf.mxu1 }
 0x34c   : > { %v921_v52 = vmul.f32 %v1660_v41, %v1660_v41 }
 0x34e   : > { %v928_v53 = vsel %vm924_vm5, %v921_v52, 0.0 }
 0x353   : > { %v1662_v43 = vpop.f32.mrf.mxu1 }
 0x354   : > { %v922_v44 = vmul.f32 %v1662_v43, %v1662_v43 }
 0x356   : > { %v931_v46 = vsel %vm924_vm5, %v922_v44, 0.0 }
 0x357   : > { %932 = vadd.xlane.f32.xlu0 %v931_v46 }
 0x35b   : > { %v1667_v47 = vpop.f32.mrf.mxu0 }
 0x35c   : > { %v920_v49 = vmul.f32 %v1667_v47, %v1667_v47 }
 0x35e   : > { %v925_v50 = vsel %vm924_vm5, %v920_v49, 0.0 }
 0x35f   : > { %926 = vadd.xlane.f32.xlu2 %v925_v50 }
 0x367   : > { %929 = vadd.xlane.f32.xlu2 %v928_v53 }
 0x373   : > { %v1675_v54 = vpop.f32.mrf.mxu1 }
 0x374   : > { %v923_v55 = vmul.f32 %v1675_v54, %v1675_v54 }
 0x376   : > { %v934_v56 = vsel %vm924_vm5, %v923_v55, 0.0 }
 0x377   : > { %935 = vadd.xlane.f32.xlu2 %v934_v56 }
 0x3a6   : > { %v1686_v9 = vpop.f32.mrf.mxu3 }
 0x3a7   : > { %1402 = vrcp.f32 %v1686_v9 }
 0x3a8   : > { %1404 = vlog2.f32 %v824_v7 }
 0x3a9   : > { %1406 = vpow2.f32 %v816_v10 }
 0x3aa   : > { %1408 = vpow2.f32 %v814_v12 }
 0x3ad   : > { %v1403_v16 = vpop.eup %1402 }
 0x3ae   : > { %770 = vrot.lane.b32.xlu1 %v1403_v16, %s1441_s15  ;;  %v1690_v17 = vpop.f32.mrf.mxu3  ;;  %v1405_v19 = vpop.eup %1404 }
 0x3af   : > { %1410 = vrcp.f32 %v1690_v17  ;;  %v1407_v23 = vpop.eup %1406  ;;  %v831_v27 = vmul.f32 0.6931472, %v1405_v19 }
 0x3b0   : > { %v1409_v28 = vpop.eup %1408  ;;  %1412 = vtanh.f32 %v789_v20  ;;  %v823_v32 = vadd.f32 1.0, %v1407_v23 }
 0x3b1   : > { %1414 = vtanh.f32 %v788_v24  ;;  %v836_v35 = vadd.f32 %v831_v27, %v804_v30  ;;  %v822_v36 = vadd.f32 1.0, %v1409_v28 }
 0x3b3   : > { %v840_v38 = vmul.f32 0.1, %v836_v35 }
 0x3b5   : > { %v1411_v33 = vpop.eup %1410  ;;  %v1332_v39 = vpack.i.bf16 %v841_v51, %v840_v38 }
 0x3b6   : > { %1318 = vrot.lane.b32.xlu1 %v1317_v29, %s1442_s16  ;;  %772 = vrot.lane.b32.xlu0 %v1411_v33, %s1441_s15  ;;  %v1699_v34 = vpop.f32.mrf.mxu3  ;;  %v1413_v37 = vpop.eup %1412 }
 0x3b7   : > { %1416 = vrcp.f32 %v1699_v34  ;;  %v1415_v48 = vpop.eup %1414  ;;  %v797_v40 = vadd.f32 1.0, %v1413_v37 }
 0x3b8   : > { %1418 = vlog2.f32 %v823_v32  ;;  %v796_v50 = vadd.f32 1.0, %v1415_v48 }
 0x3b9   : > { %1420 = vlog2.f32 %v822_v36  ;;  %v801_v53 = vmul.f32 0.5, %v797_v40 }
 0x3ba   : > { %v800_v56 = vmul.f32 0.5, %v796_v50 }
 0x3bc   : > { %v1708_v59 = vpack.i.bf16 %v801_v53, %v800_v56 }
 0x3bd   : > { %v1417_v44 = vpop.eup %1416 }
 0x3be   : > { %v1419_v46 = vpop.eup %1418  ;;  %1333 = vrot.lane.b32.xlu1 %v1332_v39, %s1442_s16  ;;  %774 = vrot.lane.b32.xlu2 %v1417_v44, %s1441_s15  ;;  %v1704_v49 = vpop.f32.mrf.mxu3 }
 0x3bf   : > { %1422 = vrcp.f32 %v1704_v49  ;;  %v1421_v52 = vpop.eup %1420  ;;  %v829_v55 = vmul.f32 0.6931472, %v1419_v46 }
 0x3c0   : > { %v827_v58 = vmul.f32 0.6931472, %v1421_v52 }
 0x3c1   : > { %v835_v62 = vadd.f32 %v829_v55, %v803_v57 }
 0x3c2   : > { %v834_v63 = vadd.f32 %v827_v58, %v802_v61 }
 0x3c3   : > { %v839_v0 = vmul.f32 0.1, %v835_v62 }
 0x3c4   : > { %v838_v1 = vmul.f32 0.1, %v834_v63 }
 0x3c5   : > { %v1423_v60 = vpop.eup %1422 }
 0x3c6   : > { %1348 = vrot.lane.b32.xlu1 %v1317_v29, %s1443_s17  ;;  %1323 = vrot.lane.b32.xlu2 %v1708_v59, %s1442_s16  ;;  %v1327_v2 = vpack.i.bf16 %v839_v0, %v838_v1 }
 0x3c7   : > { %776 = vrot.lane.b32.xlu0 %v1423_v60, %s1441_s15 }
 0x3ca   : > { %v933_v4 = vpop.xlane.xlu0 %932 }
 0x3cb   : > { %v939_v6 = vadd.f32 1e-24, %v933_v4 }
 0x3cd   : > { %vm967_vm13 = vweird.f32 %v939_v6 }
 0x3cf   : > { %1328 = vrot.lane.b32.xlu0 %v1327_v2, %s1442_s16 }
 0x3d2   : > { %v927_v45 = vpop.xlane.xlu2 %926 }
 0x3d3   : > { %v937_v3 = vadd.f32 1e-24, %v927_v45 }
 0x3d5   : > { %1424 = vrsqrt.f32 %v937_v3  ;;  %vm947_vm7 = vweird.f32 %v937_v3 }
 0x3da   : > { %v930_v42 = vpop.xlane.xlu2 %929 }
 0x3db   : > { %v1425_v5 = vpop.eup %1424  ;;  %v938_v7 = vadd.f32 1e-24, %v930_v42 }
 0x3dc   : > { %v942_v8 = vmul.f32 %v1425_v5, %v937_v3  ;;  %vm948_vm6 = vweird.f32 %v1425_v5 }
 0x3dd   : > { %1426 = vrsqrt.f32 %v938_v7  ;;  %vm949_vm9 = vmor %vm947_vm7, %vm948_vm6  ;;  %vm957_vm10 = vweird.f32 %v938_v7  ;;  %vm1064_vm6 = vcmask 113664  }
 0x3de   : > { %v943_v10 = vmul.f32 %v1425_v5, %v942_v8  ;;  %1428 = vrsqrt.f32 %v939_v6 }
 0x3e0   : > { %v944_v11 = vmul.f32 0.5, %v943_v10 }
 0x3e2   : > { %v945_v13 = vsub.f32 1.5, %v944_v11 }
 0x3e3   : > { %v1427_v12 = vpop.eup %1426 }
 0x3e4   : > { %v952_v14 = vmul.f32 %v1427_v12, %v938_v7  ;;  %v1429_v15 = vpop.eup %1428  ;;  %v946_v19 = vmul.f32 %v1425_v5, %v945_v13  ;;  %vm958_vm8 = vweird.f32 %v1427_v12 }
 0x3e5   : > { %v962_v18 = vmul.f32 %v1429_v15, %v939_v6  ;;  %vm959_vm11 = vmor %vm957_vm10, %vm958_vm8  ;;  %vm968_vm12 = vweird.f32 %v1429_v15 }
 0x3e6   : > { %v953_v16 = vmul.f32 %v1427_v12, %v952_v14  ;;  %v950_v26 = vsel %vm949_vm9, %v1425_v5, %v946_v19  ;;  %vm969_vm15 = vmor %vm967_vm13, %vm968_vm12 }
 0x3e7   : > { %v963_v24 = vmul.f32 %v1429_v15, %v962_v18  ;;  %v981_v28 = vmul.f32 %v950_v26, %v1667_v47 }
 0x3e8   : > { %v954_v20 = vmul.f32 0.5, %v953_v16 }
 0x3e9   : > { %v964_v30 = vmul.f32 0.5, %v963_v24 }
 0x3ea   : > { %v955_v21 = vsub.f32 1.5, %v954_v20  ;;  %v936_v22 = vpop.xlane.xlu2 %935 }
 0x3eb   : > { %v940_v23 = vadd.f32 1e-24, %v936_v22  ;;  %v965_v33 = vsub.f32 1.5, %v964_v30 }
 0x3ec   : > { %v956_v25 = vmul.f32 %v1427_v12, %v955_v21 }
 0x3ed   : > { %1430 = vrsqrt.f32 %v940_v23  ;;  %v966_v51 = vmul.f32 %v1429_v15, %v965_v33  ;;  %vm977_vm0 = vweird.f32 %v940_v23 }
 0x3ee   : > { %v960_v27 = vsel %vm959_vm11, %v1427_v12, %v956_v25 }
 0x3ef   : > { %v982_v29 = vmul.f32 %v960_v27, %v1660_v41  ;;  %v970_v41 = vsel %vm969_vm15, %v1429_v15, %v966_v51 }
 0x3f0   : > { %v983_v39 = vmul.f32 %v970_v41, %v1662_v43 }
 0x3f1   : > { %v1337_v31 = vpack.i.bf16 %v982_v29, %v981_v28 }
 0x3f3   : > { %v1431_v32 = vpop.eup %1430  ;;  %1338 = vrot.lane.b32.xlu2 %v1337_v31, %s1444_s18 }
 0x3f4   : > { %v972_v35 = vmul.f32 %v1431_v32, %v940_v23  ;;  %vm978_vm14 = vweird.f32 %v1431_v32 }
 0x3f5   : > { %vm979_vm1 = vmor %vm977_vm0, %vm978_vm14 }
 0x3f6   : > { %v973_v36 = vmul.f32 %v1431_v32, %v972_v35 }
 0x3f8   : > { %v974_v37 = vmul.f32 0.5, %v973_v36 }
 0x3fa   : > { %v975_v38 = vsub.f32 1.5, %v974_v37 }
 0x3fb   : > { %1353 = vrot.lane.b32.xlu2 %v1708_v59, %s1443_s17 }
 0x3fc   : > { %v976_v47 = vmul.f32 %v1431_v32, %v975_v38 }
 0x3fe   : > { %v980_v48 = vsel %vm979_vm1, %v1431_v32, %v976_v47 }
 0x3ff   : > { %v984_v40 = vmul.f32 %v980_v48, %v1675_v54 }
 0x401   : > { %v1342_v44 = vpack.i.bf16 %v984_v40, %v983_v39 }
 0x403   : > { %1343 = vrot.lane.b32.xlu0 %v1342_v44, %s1444_s18 }
 0x418   : > { %v775_v53 = vpop.permute.xlu2 %774 }
 0x419   : > { %v784_v18 = vmul.f32 %v775_v53, %v1699_v34 }
 0x420   : > { %v771_v46 = vpop.permute.xlu1 %770  ;;  %v1324_v57 = vpop.permute.xlu2 %1323 }
 0x421   : > { %v782_v43 = vmul.f32 %v771_v46, %v1686_v9  ;;  %v1326_v14 = vunpack.i.h.bf16 %v1324_v57  ;;  %v1325_v15 = vunpack.i.l.bf16 %v1324_v57 }
 0x423   : > { %v1048_v23 = vsel %vm1045_vm2, %v784_v18, %v1325_v15 }
 0x428   : > { %v773_v50 = vpop.permute.xlu0 %772  ;;  %v1319_v52 = vpop.permute.xlu1 %1318 }
 0x429   : > { %v1321_v59 = vunpack.i.h.bf16 %v1319_v52  ;;  %v1320_v60 = vunpack.i.l.bf16 %v1319_v52  ;;  %v783_v61 = vmul.f32 %v773_v50, %v1690_v17 }
 0x42b   : > { %v1046_v1 = vsel %vm1045_vm2, %v782_v43, %v1320_v60  ;;  %v1047_v2 = vsel %vm1045_vm2, %v783_v61, %v1321_v59 }
 0x430   : > { %v1334_v56 = vpop.permute.xlu1 %1333 }
 0x431   : > { %v1335_v16 = vunpack.i.l.bf16 %v1334_v56  ;;  %v1336_v21 = vunpack.i.h.bf16 %v1334_v56 }
 0x433   : > { %v1052_v26 = vsel %vm924_vm5, %v1048_v23, %v1335_v16 }
 0x438   : > { %v1349_v54 = vpop.permute.xlu1 %1348 }
 0x439   : > { %v777_v55 = vpop.permute.xlu0 %776  ;;  %v1351_v4 = vunpack.i.h.bf16 %v1349_v54  ;;  %v1350_v42 = vunpack.i.l.bf16 %v1349_v54 }
 0x43a   : > { %v785_v13 = vmul.f32 %v777_v55, %v1704_v49 }
 0x43c   : > { %v1049_v19 = vsel %vm1045_vm2, %v785_v13, %v1326_v14 }
 0x43d   : > { %v1053_v49 = vsel %vm924_vm5, %v1049_v19, %v1336_v21 }
 0x441   : > { %v1329_v58 = vpop.permute.xlu0 %1328 }
 0x442   : > { %v1331_v62 = vunpack.i.h.bf16 %v1329_v58  ;;  %v1330_v63 = vunpack.i.l.bf16 %v1329_v58 }
 0x444   : > { %v1051_v17 = vsel %vm924_vm5, %v1047_v2, %v1331_v62  ;;  %v1050_v5 = vsel %vm924_vm5, %v1046_v1, %v1330_v63 }
 0x44d   : > { %v1339_v0 = vpop.permute.xlu2 %1338 }
 0x44e   : > { %v1341_v45 = vunpack.i.h.bf16 %v1339_v0  ;;  %v1340_v3 = vunpack.i.l.bf16 %v1339_v0 }
 0x450   : > { %v1056_v9 = vsel %vm1054_vm3, %v1051_v17, %v1341_v45  ;;  %v1055_v6 = vsel %vm1054_vm3, %v1050_v5, %v1340_v3 }
 0x451   : > { %v1061_v7 = vsel %vm1059_vm4, %v1056_v9, %v1351_v4  ;;  %v1060_v8 = vsel %vm1059_vm4, %v1055_v6, %v1350_v42 }
 0x452   : > { %v1066_v10 = vsel %vm1064_vm6, %v1061_v7, 0.0  ;;  %v1065_v11 = vsel %vm1064_vm6, %v1060_v8, 0.0 }
 0x453   : > { %v1292_v12 = vpack.c.bf16 %v1066_v10, %v1065_v11 }
 0x455   : > { %1293 = vst [vmem:[%s337_s22] sm:$0xff] %v1292_v12   ;;  %v1354_v20 = vpop.permute.xlu2 %1353 }
 0x456   : > { %v1356_v27 = vunpack.i.h.bf16 %v1354_v20  ;;  %v1355_v28 = vunpack.i.l.bf16 %v1354_v20 }
 0x475   : > { %v1344_v22 = vpop.permute.xlu0 %1343 }
 0x476   : > { %v1346_v24 = vunpack.i.h.bf16 %v1344_v22  ;;  %v1345_v25 = vunpack.i.l.bf16 %v1344_v22 }
 0x478   : > { %v1057_v29 = vsel %vm1054_vm3, %v1052_v26, %v1345_v25  ;;  %v1058_v30 = vsel %vm1054_vm3, %v1053_v49, %v1346_v24 }
 0x479   : > { %v1062_v34 = vsel %vm1059_vm4, %v1057_v29, %v1355_v28  ;;  %v1063_v31 = vsel %vm1059_vm4, %v1058_v30, %v1356_v27 }
 0x47a   : > { %v1067_v32 = vsel %vm1064_vm6, %v1062_v34, 0.0  ;;  %v1068_v33 = vsel %vm1064_vm6, %v1063_v31, 0.0 }
 0x47b   : > { %v1297_v35 = vpack.c.bf16 %v1068_v33, %v1067_v32 }
 0x47d   : > { %1299 = vst [vmem:[%s337_s22 + $0x8] sm:$0xff] %v1297_v35  }
 0x47e PF: > { %s19_s30 = sadd.s32 1, %s1438_s30  }
 0x47f   : > { %p16_p4 = scmp.ge.s32.totalorder %s19_s30, 4  }
 0x481   :  { %18 = sbr.rel (!%p16_p4) target bundleno = 1 (0x1), region = 86 }

</bundles_post_ra>
